<compile_context>
chip_gen: v7x
topology: tpu7x:2x2x1
jax: 0.10.0
libtpu: 0.0.40
codegen_flags: <defaults>
</compile_context>

<pallas_src>
import jax
import jax.numpy as jnp
from jax.experimental import pallas as pl
from jax.experimental.pallas import tpu as pltpu


def _fuser_kernel(x_ref, head_ref, tail_ref, o_ref):
    # x_ref   : (B_BLK, P*E)       patch tokens for this batch block (flattened rows)
    # head_ref: (1,     E)         cls_token + pos_embed[:, 0, :]  (resident, shared)
    # tail_ref: (1,     P*E)       pos_embed[:, 1:, :] flattened   (resident, shared)
    # o_ref   : (B_BLK, (P+1)*E)   fused output rows for this batch block
    rows = o_ref.shape[0]
    e = head_ref.shape[-1]

    # Head column: identical for every batch row -> one broadcast store.
    o_ref[:, :e] = jnp.broadcast_to(head_ref[...], (rows, e)).astype(o_ref.dtype)
    # Tail: x + pos_tail (pos broadcast over rows) -> one direct, lane-dense store.
    # No concatenate, no full-row temp; jnp promotion handles mixed dtypes (bf16 + f32).
    o_ref[:, e:] = (x_ref[...] + tail_ref[...]).astype(o_ref.dtype)
    # TODO(synk): drop_rate > 0 dropout would need pltpu.prng_seed(seed + program_id)
    # + pltpu.prng_random_bits per batch block; default drop_rate=0.0 is an identity.


def _pick_batch_block(batch, x_row_bytes, out_row_bytes,
                      vmem_budget_bytes=24 * 1024 * 1024):
    """Rows per grid step, budgeted against *total* per-step VMEM:
    double-buffered x block + double-buffered out block (~2*x + 2*out per step).

    - Whole batch in one block if it fits the budget and the batch is small.
    - Otherwise a multiple of 8 (so the block shape satisfies the (8, 128) rule;
      the trailing partial block is handled by Pallas with dropped OOB writes).
    - When batch >= 16, cap at ceil(batch/2) rounded up to a multiple of 8 so the
      grid has >= 2 "parallel" steps (both v7x TensorCores contribute HBM bandwidth).
    """
    per_row = 2 * (x_row_bytes + out_row_bytes)
    blk = max(1, vmem_budget_bytes // max(per_row, 1))
    if blk >= batch:
        blk = batch
    else:
        blk = max(8, (blk // 8) * 8)
    if batch >= 16:
        half = -(-batch // 2)          # cdiv(batch, 2)
        half = -(-half // 8) * 8       # round up to a multiple of 8
        blk = max(8, min(blk, half))
    return blk


def vit_token_fuser_2p5d(x, cls_token, pos_embed, drop_rate=0.0, batch_block=None):
    """x: (B, P, E_local); cls_token: (1, 1, E_local); pos_embed: (1, P+1, E_local)."""
    assert drop_rate == 0.0, "only drop_rate=0.0 (identity dropout) is implemented"
    B, P, E = x.shape
    S1 = P + 1
    assert cls_token.shape == (1, 1, E)
    assert pos_embed.shape == (1, S1, E)

    # PyTorch-style promotion: concat(cls, x) + pos  ->  result_type(x, cls, pos).
    out_dtype = jnp.result_type(x.dtype, cls_token.dtype, pos_embed.dtype)

    # Precompute (tiny, one-time, in the wrapper):
    #   head = cls + pos[:, 0, :]   -- shared across all batch rows
    #   tail = pos[:, 1:, :]        -- flattened lane-dense
    head = (cls_token[:, 0, :].astype(out_dtype)
            + pos_embed[:, 0, :].astype(out_dtype))            # (1, E)
    tail = pos_embed[:, 1:, :].reshape(1, P * E)               # (1, P*E)

    # Lane-dense 2-D view of x (contiguous row-major reshape; reshaped back after).
    x2 = x.reshape(B, P * E)

    x_row_bytes = P * E * jnp.dtype(x.dtype).itemsize
    out_row_bytes = S1 * E * jnp.dtype(out_dtype).itemsize
    b_blk = batch_block if batch_block is not None else _pick_batch_block(
        B, x_row_bytes, out_row_bytes)
    grid_b = pl.cdiv(B, b_blk)

    out2 = pl.pallas_call(
        _fuser_kernel,
        out_shape=jax.ShapeDtypeStruct((B, S1 * E), out_dtype),
        grid_spec=pltpu.PrefetchScalarGridSpec(
            num_scalar_prefetch=0,
            grid=(grid_b,),
            in_specs=[
                pl.BlockSpec((b_blk, P * E), lambda b: (b, 0)),   # x: per batch block
                pl.BlockSpec((1, E), lambda b: (0, 0)),           # head: shared/resident
                pl.BlockSpec((1, P * E), lambda b: (0, 0)),       # tail: shared/resident
            ],
            out_specs=pl.BlockSpec((b_blk, S1 * E), lambda b: (b, 0)),
        ),
        compiler_params=pltpu.CompilerParams(
            dimension_semantics=("parallel",),
            # ~24 MiB budgeted per step (2x x-block + 2x out-block) + resident pos;
            # 48 MiB scoped limit fits v7x's 64 MiB physical and is well under
            # v5e/v6e's 128 MiB while lifting v5e's 16 MiB / v6e's 32 MiB defaults.
            vmem_limit_bytes=48 * 1024 * 1024,
        ),
        # NOTE: pipeline_mode=pl.Buffered(1) on the head/tail specs would drop their
        # (tiny) double buffers; skipped to keep lowering maximally portable.
    )(x2, head, tail)

    return out2.reshape(B, S1, E)


if __name__ == "__main__":
    # Module hyper-params (small, consistent with the forward):
    img_size = 16
    patch_size = 4
    embed_dim = 32
    tesseract_dim = 2                       # 2.5D tensor-parallel column dim
    e_local = embed_dim // tesseract_dim    # 16
    grid_size = img_size // patch_size      # 4
    num_patches = grid_size * grid_size     # 16
    batch = 2

    key = jax.random.PRNGKey(0)
    kx, kc, kp = jax.random.split(key, 3)
    x = jax.random.normal(kx, (batch, num_patches, e_local), dtype=jnp.float32)
    cls_token = 0.02 * jax.random.normal(kc, (1, 1, e_local), dtype=jnp.float32)
    pos_embed = 0.02 * jax.random.normal(kp, (1, num_patches + 1, e_local),
                                         dtype=jnp.float32)

    def reference(xr, cls, pos):
        cls_b = jnp.broadcast_to(cls, (xr.shape[0], 1, xr.shape[-1]))
        return jnp.concatenate([cls_b, xr], axis=1) + pos

    # 1) Main test (matches the module's toy configuration).
    out = jax.block_until_ready(vit_token_fuser_2p5d(x, cls_token, pos_embed))
    ref = reference(x, cls_token, pos_embed)
    assert out.shape == (batch, num_patches + 1, e_local)
    assert jnp.allclose(out, ref, atol=1e-6, rtol=1e-6)

    # 2) Multi-step grid with a partial trailing batch block (B % b_blk != 0).
    b2 = 20
    x_big = jax.random.normal(kx, (b2, num_patches, e_local), dtype=jnp.float32)
    out_big = jax.block_until_ready(
        vit_token_fuser_2p5d(x_big, cls_token, pos_embed, batch_block=8))
    assert jnp.allclose(out_big, reference(x_big, cls_token, pos_embed),
                        atol=1e-6, rtol=1e-6)

    # 3) Mixed dtypes: bf16 activations + f32 params -> f32 output (PyTorch promotion).
    x_bf16 = x.astype(jnp.bfloat16)
    out_mix = jax.block_until_ready(vit_token_fuser_2p5d(x_bf16, cls_token, pos_embed))
    ref_mix = reference(x_bf16.astype(jnp.float32), cls_token, pos_embed)
    assert out_mix.dtype == jnp.float32
    assert jnp.allclose(out_mix, ref_mix, atol=1e-5, rtol=1e-5)

    print("KERNEL_OK")
</pallas_src>

<mosaic_0001>
module attributes {stable_mosaic.version = 11 : i64} {
  func.func @_fuser_kernel(%arg0: i32, %arg1: memref<2x256xf32, #tpu.memory_space<vmem>>, %arg2: memref<1x16xf32, #tpu.memory_space<vmem>>, %arg3: memref<1x256xf32, #tpu.memory_space<vmem>>, %arg4: memref<2x272xf32, #tpu.memory_space<vmem>>) attributes {dimension_semantics = [#tpu.dimension_semantics<parallel>], iteration_bounds = array<i64: 1>, scalar_prefetch = 0 : i64, scratch_operands = 0 : i64, tpu.core_type = #tpu.core_type<tc>, window_params = [{transform_indices = @transform_0, window_bounds = array<i64: 2, 256>}, {pipeline_mode = #tpu.pipeline_mode<synchronous>, transform_indices = @transform_1, window_bounds = array<i64: 1, 16>}, {pipeline_mode = #tpu.pipeline_mode<synchronous>, transform_indices = @transform_2, window_bounds = array<i64: 1, 256>}, {transform_indices = @transform_3, window_bounds = array<i64: 2, 272>}]} {
    %c0 = arith.constant 0 : index
    %c0_0 = arith.constant 0 : index
    %0 = vector.load %arg2[%c0, %c0_0] : memref<1x16xf32, #tpu.memory_space<vmem>>, vector<1x16xf32>
    %1 = vector.shape_cast %0 : vector<1x16xf32> to vector<1x16xf32>
    %2 = vector.broadcast %1 : vector<1x16xf32> to vector<2x16xf32>
    %c0_1 = arith.constant 0 : index
    %c0_2 = arith.constant 0 : index
    %3 = vector.load %arg4[%c0_1, %c0_2] : memref<2x272xf32, #tpu.memory_space<vmem>>, vector<2x16xf32>
    tpu.vector_store %arg4[%c0_1, %c0_2], %2 {strides = array<i32>} : memref<2x272xf32, #tpu.memory_space<vmem>>, vector<2x16xf32>,
    %c0_3 = arith.constant 0 : index
    %c0_4 = arith.constant 0 : index
    %4 = vector.load %arg1[%c0_3, %c0_4] : memref<2x256xf32, #tpu.memory_space<vmem>>, vector<2x256xf32>
    %c0_5 = arith.constant 0 : index
    %c0_6 = arith.constant 0 : index
    %5 = vector.load %arg3[%c0_5, %c0_6] : memref<1x256xf32, #tpu.memory_space<vmem>>, vector<1x256xf32>
    %6 = vector.broadcast %5 : vector<1x256xf32> to vector<2x256xf32>
    %7 = arith.addf %4, %6 : vector<2x256xf32>
    %c0_7 = arith.constant 0 : index
    %c16 = arith.constant 16 : index
    %8 = vector.load %arg4[%c0_7, %c16] : memref<2x272xf32, #tpu.memory_space<vmem>>, vector<2x256xf32>
    tpu.vector_store %arg4[%c0_7, %c16], %7 {strides = array<i32>} : memref<2x272xf32, #tpu.memory_space<vmem>>, vector<2x256xf32>,
    return
  }
  func.func @transform_0(%arg0: i32) -> (i32, i32) {
    %c0_i32 = arith.constant 0 : i32
    %c0_i32_0 = arith.constant 0 : i32
    return %arg0, %c0_i32 : i32, i32
  }
  func.func @transform_1(%arg0: i32) -> (i32, i32) {
    %c0_i32 = arith.constant 0 : i32
    %c0_i32_0 = arith.constant 0 : i32
    %c0_i32_1 = arith.constant 0 : i32
    return %c0_i32, %c0_i32_0 : i32, i32
  }
  func.func @transform_2(%arg0: i32) -> (i32, i32) {
    %c0_i32 = arith.constant 0 : i32
    %c0_i32_0 = arith.constant 0 : i32
    %c0_i32_1 = arith.constant 0 : i32
    return %c0_i32, %c0_i32_0 : i32, i32
  }
  func.func @transform_3(%arg0: i32) -> (i32, i32) {
    %c0_i32 = arith.constant 0 : i32
    %c0_i32_0 = arith.constant 0 : i32
    return %arg0, %c0_i32 : i32, i32
  }
}

</mosaic_0001>

<bundles_post_ra>
// kernel: tpu_custom_call.1
= control target key start
LH: loop header
LB: loop body
LE: loop exit
PB: predicated region body
PF: predicated region fallthrough
CT: control target
= control target key end

     0   :  { %8 = vsyncpa [#allocation3], 0  ;;  %s192_s0 = inlined_call_operand.hbm [shape: f32[2,256], index: 0, kind: input, shape index: {}]   ;;  %s193_s1 = inlined_call_operand.vmem [shape: f32[1,16], index: 1, kind: input, shape index: {}]   ;;  %s194_s2 = inlined_call_operand.vmem [shape: f32[1,256], index: 2, kind: input, shape index: {}]   ;;  %s195_s3 = inlined_call_operand.hbm [shape: f32[2,272], index: 3, kind: output, shape index: {}]  }
   0x1   :  { %9 = vsyncpa [#allocation4], 0  ;;  %s138_s12 = smov [#allocation2]   ;;  %s90_s16 = scalar_lea.hbm %s192_s0, 64 }
   0x2   :  { %s16_s13 = sshll.u32 %s138_s12, 4  ;;  %p91_p0 = scmp.ne.s32.totalorder %s192_s0, %s90_s16  ;;  %s17_s13 = int_to_ptr.vmem [resolvable:$true] %s16_s13 }
   0x3   :  { %p94_p1 = scmp.lt.u32.totalorder %s90_s16, %s192_s0 }
   0x5   :  { %p96_p2 = pnand %p94_p1, %p91_p0 }
   0x7   :  { %99 = shalt.err (!%p96_p2)
}
   0x8   :  { %s100_s21 = scalar_lea.vmem %s17_s13, 64  ;;  %p105_p4 = scmp.lt.s32.totalorder %s17_s13, %s17_s13 }
   0x9   :  { %p101_p3 = scmp.ne.s32.totalorder %s17_s13, %s100_s21  ;;  %p106_p5 = scmp.lt.s32.totalorder %s100_s21, %s100_s21 }
   0xb   :  { %p107_p6 = por %p106_p5, %p105_p4 }
   0xd   :  { %p108_p7 = pnand %p107_p6, %p101_p3 }
   0xf   :  { %111 = shalt.err (!%p108_p7)
}
  0x10   :  { %19 = dma.hbm_to_vmem [thread:$0]  %s192_s0, 64, %s17_s13, [#allocation3]  }
  0x11   :  { %134 = dma.done.wait [#allocation3], 64  }
  0x12   :  { %135 = vsyncadd [#allocation3], 4294967232  ;;  %v39_v0 = vlaneseq  ;;  %v139_v1 = vmov 1983009808   ;;  %vm34_vm0 = vcmask 123904   ;;  %s140_s0 = smov 16  }
  0x13   :  { %v49_v2 = vunpack.c.l.s4 %v139_v1  ;;  %v37_v7 = vld [vmem:[%s194_s2] sm:$0x3]  ;;  %vm64_vm1 = vcmask 1041536   ;;  %vm65_vm2 = vcmask 1043458   ;;  %vm67_vm4 = vcmask 128004   ;;  %s141_s28 = smov [#allocation5]  }
  0x14   :  { %v40_v3 = vshrl.u32 %v39_v0, 7  ;;  %v85_v8 = vld [vmem:[%s193_s1] ss:$0 sm:$0xff]  ;;  %vm66_vm3 = vmor %vm65_vm2, %vm64_vm1  ;;  %s76_s2 = sshll.u32 %s141_s28, 4  ;;  %vm61_vm5 = vcmask 130048   ;;  %s77_s2 = int_to_ptr.vmem [resolvable:$true] %s76_s2 }
  0x15   :  { %v50_v6 = vunpack.c.0.s8 %v49_v2  ;;  %35 = vst.msk [vmem:[#allocation5] sm:$0x3] %vm34_vm0, %v85_v8  ;;  %v36_v13 = vld [vmem:[#allocation2] sm:$0xf]  ;;  %vm68_vm6 = vmor %vm67_vm4, %vm66_vm3  ;;  %s112_s1 = scalar_lea.vmem %s77_s2, 96  ;;  %p117_p9 = scmp.lt.s32.totalorder %s77_s2, %s77_s2 }
  0x16   :  { %v41_v4 = vsub.s32 0, %v40_v3  ;;  %v45_v5 = vsub.s32 1, %v40_v3  ;;  %p113_p8 = scmp.ne.s32.totalorder %s77_s2, %s112_s1  ;;  %p118_p10 = scmp.lt.s32.totalorder %s112_s1, %s112_s1 }
  0x17   :  { %v53_v11 = vsub.s32 %v50_v6, %v40_v3 }
  0x18   :  { %v42_v9 = vrot.slane %v37_v7, %v41_v4  ;;  %v46_v10 = vrot.slane %v37_v7, %v45_v5  ;;  %p119_p11 = por %p118_p10, %p117_p9 }
  0x1a   :  { %v47_v12 = vcombine.low %v42_v9, %v46_v10  ;;  %p120_p12 = pnand %p119_p11, %p113_p8 }
  0x1c   :  { %v54_v14 = vrot.slane %v47_v12, %v53_v11 }
  0x1e   :  { %v56_v15 = vadd.f32 %v54_v14, %v36_v13 }
  0x20   :  { %58 = vrot.lane.b32.xlu0 %v56_v15, %s140_s0 }
  0x92   :  { %v59_v16 = vpop.permute.xlu0 %58 }
  0x93   :  { %v60_v17 = vrot.slane %v59_v16, 6 }
  0x95   :  { %v62_v18 = vsel %vm61_vm5, %v60_v17, %v59_v16 }
  0x96   :  { %69 = vst.msk [vmem:[#allocation5] sm:$0x3f] %vm68_vm6, %v62_v18 }
  0x97   :  { %123 = shalt.err (!%p120_p12)
}
  0x98   :  { %s124_s4 = scalar_lea.hbm %s195_s3, 96 }
  0x99   :  { %p125_p13 = scmp.ne.s32.totalorder %s195_s3, %s124_s4  ;;  %p128_p0 = scmp.lt.u32.totalorder %s124_s4, %s195_s3 }
  0x9b   :  { %p130_p1 = pnand %p128_p0, %p125_p13 }
  0x9d   :  { %133 = shalt.err (!%p130_p1)
}
  0x9e   :  { %79 = dma.vmem_to_hbm [thread:$0]  %s77_s2, 96, %s195_s3, [#allocation4]  }
  0x9f   :  { %136 = dma.done.wait [#allocation4], 96  }
  0xa0   :  { %137 = vsyncadd [#allocation4], 4294967200 }
  0xa1   :  { %83 = vsyncpa [#allocation3], 1 }
  0xa2   :  { %84 = vsyncpa [#allocation4], 1 }

</bundles_post_ra>
